<compile_context>
chip_gen: v5e
topology: v5e:2x2
jax: 0.10.0
libtpu: 0.0.40
codegen_flags: <defaults>
</compile_context>

<pallas_src>
import jax
import jax.numpy as jnp
from jax.experimental import pallas as pl
from jax.experimental.pallas import tpu as pltpu

# ---- small, deterministic hyper-parameters (consistent with __init__) -------
VOCAB_SIZE = 50
EMBED_DIM = 16
NUM_FILTERS = 8
FILTER_SIZES = (2, 3)
NUMERICAL_DIM = 4
HIDDEN_DIMS = (64, 32)
SEQ_LEN = 8
BATCH = 2

# ---- derived layout constants (shared by prepare_params and the kernel) -----
FS_MAX = max(FILTER_SIZES)
N_FS = len(FILTER_SIZES)
N_CONV = N_FS * NUM_FILTERS                    # 16 pooled conv features
KX = FS_MAX * EMBED_DIM                        # 48 im2col width


def _r8(n):
    return ((n + 7) // 8) * 8


V_PAD = _r8(VOCAB_SIZE)                        # 56  embedding rows (padded)
KX_PAD = _r8(KX + 1)                           # 56  conv K (+ bias col, padded)
C1_PAD = _r8(N_CONV + NUMERICAL_DIM + 1)       # 24  fc1 K (+ bias col, padded)
H1_PAD = _r8(HIDDEN_DIMS[0] + 1)               # 72  fc2 K (+ bias col, padded)
H2_PAD = _r8(HIDDEN_DIMS[1] + 1)               # 40  fc3 K (+ bias col, padded)
BL = BATCH * SEQ_LEN                           # 16
BL_PAD = _r8(BL)                               # 16
SLAB_W = max(EMBED_DIM, N_CONV, HIDDEN_DIMS[0], HIDDEN_DIMS[1], H2_PAD)  # 64

OFF_TBL = 0                                    # embedding table
OFF_WC = OFF_TBL + V_PAD                       # packed conv weight (+bias row)
OFF_W1 = OFF_WC + KX_PAD                       # fc1 weight (+bias row)
OFF_W2 = OFF_W1 + C1_PAD                       # fc2 weight (+bias row)
OFF_W3 = OFF_W2 + H1_PAD                       # fc3 row [w3 | b3]
OFF_MSK = OFF_W3 + 8                           # static pooling mask
SLAB_ROWS = OFF_MSK + BL_PAD                   # 232


def prepare_params(params, batch=BATCH, seq_len=SEQ_LEN):
    """One-time packing (hoisted out of the per-call path).

    Folds every bias into its weight matrix (extra ones-column / bias-row),
    packs the whole Conv1d bank into a single (KX, N_CONV) matrix, builds the
    static max-over-time validity mask, and concatenates everything into ONE
    (SLAB_ROWS, SLAB_W) f32 slab -> a single DMA at call time.
    """
    f32 = jnp.float32

    def pad_to(a, rows, cols=SLAB_W):
        a = jnp.asarray(a, f32)
        return jnp.pad(a, ((0, rows - a.shape[0]), (0, cols - a.shape[1])))

    # conv bank: tap-major (KX, N_CONV), missing taps zero, bias row appended
    blocks = []
    for k in range(FS_MAX):
        row = []
        for i, fs in enumerate(FILTER_SIZES):
            row.append(params[f'wc{i}'][k] if k < fs
                       else jnp.zeros((EMBED_DIM, NUM_FILTERS), f32))
        blocks.append(jnp.concatenate(row, axis=1))
    w_conv = jnp.concatenate(blocks, axis=0)                            # (48,16)
    b_conv = jnp.concatenate([params[f'bc{i}'] for i in range(N_FS)], axis=1)
    wc_ext = jnp.concatenate([w_conv, b_conv], axis=0)                  # (49,16)

    w1_ext = jnp.concatenate([params['w1'], params['b1']], axis=0)      # (21,64)
    w2_ext = jnp.concatenate([params['w2'], params['b2']], axis=0)      # (65,32)
    w3_row = jnp.concatenate([params['w3'].T, params['b3']], axis=1)    # (1,33)

    # static 0/1 validity mask for max-over-time: row (b*L + t), col group i is
    # valid iff t <= L - fs_i.  Zero-masking is safe post-ReLU.
    t = jnp.arange(seq_len)
    cols = [jnp.tile((t <= seq_len - fs).astype(f32)[:, None], (1, NUM_FILTERS))
            for fs in FILTER_SIZES]
    mask = jnp.tile(jnp.concatenate(cols, axis=1), (batch, 1))          # (B*L,16)

    slab = jnp.concatenate([
        pad_to(params['embedding'], V_PAD),
        pad_to(wc_ext, KX_PAD),
        pad_to(w1_ext, C1_PAD),
        pad_to(w2_ext, H1_PAD),
        pad_to(w3_row, 8),
        pad_to(mask, BL_PAD),
    ], axis=0)
    assert slab.shape == (SLAB_ROWS, SLAB_W)
    return slab


def make_kernel(batch, seq_len):
    bl = batch * seq_len
    n_ones_conv = KX_PAD - KX                          # bias col + zero-row pad
    n_ones_c1 = C1_PAD - N_CONV - NUMERICAL_DIM
    n_ones_h1 = H1_PAD - HIDDEN_DIMS[0]
    n_ones_h2 = H2_PAD - HIDDEN_DIMS[1]

    def kernel(ids_ref, num_ref, slab_ref, out_ref):
        f32 = jnp.float32

        # --- embedding gather fused in-kernel: one-hot @ table on the MXU ----
        ids = ids_ref[...]                                         # (B*L,1) i32
        vidx = jax.lax.broadcasted_iota(jnp.int32, (bl, V_PAD), 1)
        onehot = (vidx == ids).astype(f32)                         # (B*L,V_PAD)
        table = slab_ref[OFF_TBL:OFF_TBL + V_PAD, 0:EMBED_DIM]     # (V_PAD, E)
        emb = jnp.dot(onehot, table, preferred_element_type=f32)   # (B*L, E)

        # --- im2col via full-tile sublane rolls; whole conv bank = 1 matmul --
        taps = [emb]
        for k in range(1, FS_MAX):
            taps.append(pltpu.roll(emb, shift=bl - k, axis=0))     # row t: x[t+k]
        ones_c = jnp.ones((bl, n_ones_conv), f32)   # bias column (+ zero pad)
        x_cat = jnp.concatenate(taps + [ones_c], axis=1)           # (B*L,KX_PAD)
        wc = slab_ref[OFF_WC:OFF_WC + KX_PAD, 0:N_CONV]            # (KX_PAD,16)
        conv = jnp.maximum(
            jnp.dot(x_cat, wc, preferred_element_type=f32), 0.0)   # (B*L, 16)

        # --- static (precomputed) validity mask, then max-over-time ----------
        mask = slab_ref[OFF_MSK:OFF_MSK + bl, 0:N_CONV]            # (B*L, 16)
        conv = conv * mask            # zero target is safe: conv >= 0 (ReLU)
        pooled = jnp.max(conv.reshape(batch, seq_len, N_CONV), axis=1)  # (B,16)

        # --- MLP head; biases folded via ones columns (dropout = identity) ---
        ones1 = jnp.ones((batch, n_ones_c1), f32)
        combined = jnp.concatenate([pooled, num_ref[...], ones1], axis=1)
        w1 = slab_ref[OFF_W1:OFF_W1 + C1_PAD, 0:HIDDEN_DIMS[0]]    # (24, 64)
        h1 = jnp.maximum(
            jnp.dot(combined, w1, preferred_element_type=f32), 0.0)      # (B,64)
        h1e = jnp.concatenate([h1, jnp.ones((batch, n_ones_h1), f32)], axis=1)
        w2 = slab_ref[OFF_W2:OFF_W2 + H1_PAD, 0:HIDDEN_DIMS[1]]    # (72, 32)
        h2 = jnp.maximum(
            jnp.dot(h1e, w2, preferred_element_type=f32), 0.0)           # (B,32)
        h2e = jnp.concatenate([h2, jnp.ones((batch, n_ones_h2), f32)], axis=1)
        w3 = slab_ref[OFF_W3:OFF_W3 + 1, 0:H2_PAD]                 # (1, 40)
        # final N=1 layer on the VPU + lane reduce (no MXU push/drain)
        out_ref[...] = jnp.sum(h2e * w3, axis=-1, keepdims=True)   # (B, 1)

    return kernel


def cnn_text_forward(text, numerical, slab):
    """Per-call path: one trivial id reshape + ONE pallas_call (3 input DMAs)."""
    B, L = text.shape
    ids = text.reshape(B * L, 1).astype(jnp.int32)
    vmem_spec = pl.BlockSpec(memory_space=pltpu.MemorySpace.VMEM)
    out = pl.pallas_call(
        make_kernel(B, L),
        out_shape=jax.ShapeDtypeStruct((B, 1), jnp.float32),
        in_specs=[vmem_spec, vmem_spec, vmem_spec],
        out_specs=vmem_spec,
    )(ids, numerical.astype(jnp.float32), slab)
    return jnp.squeeze(out)   # matches output.squeeze() -> (B,)


def reference_forward(text, numerical, params):
    """Plain-JAX reference mirroring the PyTorch forward (eval mode)."""
    emb = jnp.take(params['embedding'], text, axis=0)    # (B, L, E)
    pooled = []
    for i, fs in enumerate(FILTER_SIZES):
        wc, bc = params[f'wc{i}'], params[f'bc{i}']
        T = SEQ_LEN - fs + 1
        acc = sum(jnp.einsum('bte,ef->btf', emb[:, k:k + T, :], wc[k])
                  for k in range(fs))
        acc = jnp.maximum(acc + bc, 0.0)
        pooled.append(jnp.max(acc, axis=1))
    combined = jnp.concatenate(pooled + [numerical], axis=1)
    h = jnp.maximum(combined @ params['w1'] + params['b1'], 0.0)
    h = jnp.maximum(h @ params['w2'] + params['b2'], 0.0)
    out = h @ params['w3'] + params['b3']
    return jnp.squeeze(out)


def init_params(key):
    keys = jax.random.split(key, 16)
    p = {}
    emb = jax.random.normal(keys[0], (VOCAB_SIZE, EMBED_DIM), jnp.float32) * 0.1
    p['embedding'] = emb.at[0].set(0.0)   # padding_idx=0
    for i, fs in enumerate(FILTER_SIZES):
        # stored as (fs, E, F): wc[k][e, f] == torch_conv.weight[f, e, k]
        p[f'wc{i}'] = jax.random.normal(keys[1 + i], (fs, EMBED_DIM, NUM_FILTERS),
                                        jnp.float32) * 0.1
        p[f'bc{i}'] = jax.random.normal(keys[5 + i], (1, NUM_FILTERS),
                                        jnp.float32) * 0.1
    combined = NUM_FILTERS * len(FILTER_SIZES) + NUMERICAL_DIM
    dims = [combined] + list(HIDDEN_DIMS) + [1]
    for j in range(3):
        p[f'w{j + 1}'] = jax.random.normal(keys[9 + 2 * j], (dims[j], dims[j + 1]),
                                           jnp.float32) * 0.1
        p[f'b{j + 1}'] = jax.random.normal(keys[10 + 2 * j], (1, dims[j + 1]),
                                           jnp.float32) * 0.1
    return p


if __name__ == "__main__":
    key = jax.random.PRNGKey(0)
    k_param, k_text, k_num = jax.random.split(key, 3)
    params = init_params(k_param)

    # one-time parameter packing, hoisted out of the forward path
    slab = jax.block_until_ready(prepare_params(params))

    text = jax.random.randint(k_text, (BATCH, SEQ_LEN), 0, VOCAB_SIZE,
                              dtype=jnp.int32)
    numerical = jax.random.normal(k_num, (BATCH, NUMERICAL_DIM), jnp.float32)

    out = cnn_text_forward(text, numerical, slab)
    out = jax.block_until_ready(out)

    ref = reference_forward(text, numerical, params)
    assert out.shape == (BATCH,)
    assert jnp.allclose(out, ref, atol=1e-4, rtol=1e-4), (out, ref)
    print("KERNEL_OK")
</pallas_src>

<mosaic_0001>
module attributes {stable_mosaic.version = 11 : i64} {
  func.func @kernel(%arg0: memref<16x1xi32, #tpu.memory_space<vmem>>, %arg1: memref<2x4xf32, #tpu.memory_space<vmem>>, %arg2: memref<232x64xf32, #tpu.memory_space<vmem>>, %arg3: memref<2x1xf32, #tpu.memory_space<vmem>>) attributes {dimension_semantics = [], scalar_prefetch = 0 : i64, scratch_operands = 0 : i64, tpu.core_type = #tpu.core_type<tc>} {
    %c0 = arith.constant 0 : index
    %c0_0 = arith.constant 0 : index
    %0 = vector.load %arg0[%c0, %c0_0] : memref<16x1xi32, #tpu.memory_space<vmem>>, vector<16x1xi32>
    %1 = tpu.iota {dimensions = array<i32: 1>} : vector<16x56xi32>
    %2 = vector.broadcast %0 : vector<16x1xi32> to vector<16x56xi32>
    %3 = arith.cmpi eq, %1, %2 : vector<16x56xi32>
    %4 = arith.extui %3 : vector<16x56xi1> to vector<16x56xi32>
    %5 = arith.sitofp %4 : vector<16x56xi32> to vector<16x56xf32>
    %c0_1 = arith.constant 0 : index
    %c0_2 = arith.constant 0 : index
    %6 = vector.load %arg2[%c0_1, %c0_2] : memref<232x64xf32, #tpu.memory_space<vmem>>, vector<56x16xf32>
    %cst = arith.constant dense<0.000000e+00> : vector<16x16xf32>
    %7 = tpu.matmul %5, %6, %cst {dimension_numbers = #tpu.dot_dimension_numbers<[1], [0], [0], [1], [0, 0, 1, 1], [], []>} : vector<16x56xf32>, vector<56x16xf32>, vector<16x16xf32> -> vector<16x16xf32>
    %c15_i32 = arith.constant 15 : i32
    %8 = tpu.dynamic_rotate %7 by %c15_i32 dim 0 : vector<16x16xf32>, i32 -> vector<16x16xf32>
    %c14_i32 = arith.constant 14 : i32
    %9 = tpu.dynamic_rotate %7 by %c14_i32 dim 0 : vector<16x16xf32>, i32 -> vector<16x16xf32>
    %cst_3 = arith.constant 1.000000e+00 : f32
    %10 = vector.broadcast %cst_3 : f32 to vector<16x8xf32>
    %11 = tpu.concatenate %7, %8, %9, %10 in 1 : vector<16x16xf32>, vector<16x16xf32>, vector<16x16xf32>, vector<16x8xf32> -> vector<16x56xf32>
    %c56 = arith.constant 56 : index
    %c0_4 = arith.constant 0 : index
    %12 = vector.load %arg2[%c56, %c0_4] : memref<232x64xf32, #tpu.memory_space<vmem>>, vector<56x16xf32>
    %cst_5 = arith.constant dense<0.000000e+00> : vector<16x16xf32>
    %13 = tpu.matmul %11, %12, %cst_5 {dimension_numbers = #tpu.dot_dimension_numbers<[1], [0], [0], [1], [0, 0, 1, 1], [], []>} : vector<16x56xf32>, vector<56x16xf32>, vector<16x16xf32> -> vector<16x16xf32>
    %cst_6 = arith.constant 0.000000e+00 : f32
    %14 = vector.broadcast %cst_6 : f32 to vector<16x16xf32>
    %15 = arith.maximumf %13, %14 : vector<16x16xf32>
    %c216 = arith.constant 216 : index
    %c0_7 = arith.constant 0 : index
    %16 = vector.load %arg2[%c216, %c0_7] : memref<232x64xf32, #tpu.memory_space<vmem>>, vector<16x16xf32>
    %17 = arith.mulf %15, %16 : vector<16x16xf32>
    %18 = vector.shape_cast %17 : vector<16x16xf32> to vector<2x8x16xf32>
    %cst_8 = arith.constant dense<0xFF800000> : vector<2x16xf32>
    %19 = vector.multi_reduction <maximumf>, %18, %cst_8 [1] : vector<2x8x16xf32> to vector<2x16xf32>
    %cst_9 = arith.constant 1.000000e+00 : f32
    %20 = vector.broadcast %cst_9 : f32 to vector<2x4xf32>
    %c0_10 = arith.constant 0 : index
    %c0_11 = arith.constant 0 : index
    %21 = vector.load %arg1[%c0_10, %c0_11] : memref<2x4xf32, #tpu.memory_space<vmem>>, vector<2x4xf32>
    %22 = tpu.concatenate %19, %21, %20 in 1 : vector<2x16xf32>, vector<2x4xf32>, vector<2x4xf32> -> vector<2x24xf32>
    %c112 = arith.constant 112 : index
    %c0_12 = arith.constant 0 : index
    %23 = vector.load %arg2[%c112, %c0_12] : memref<232x64xf32, #tpu.memory_space<vmem>>, vector<24x64xf32>
    %cst_13 = arith.constant dense<0.000000e+00> : vector<2x64xf32>
    %24 = tpu.matmul %22, %23, %cst_13 {dimension_numbers = #tpu.dot_dimension_numbers<[1], [0], [0], [1], [0, 0, 1, 1], [], []>} : vector<2x24xf32>, vector<24x64xf32>, vector<2x64xf32> -> vector<2x64xf32>
    %cst_14 = arith.constant 0.000000e+00 : f32
    %25 = vector.broadcast %cst_14 : f32 to vector<2x64xf32>
    %26 = arith.maximumf %24, %25 : vector<2x64xf32>
    %cst_15 = arith.constant 1.000000e+00 : f32
    %27 = vector.broadcast %cst_15 : f32 to vector<2x8xf32>
    %28 = tpu.concatenate %26, %27 in 1 : vector<2x64xf32>, vector<2x8xf32> -> vector<2x72xf32>
    %c136 = arith.constant 136 : index
    %c0_16 = arith.constant 0 : index
    %29 = vector.load %arg2[%c136, %c0_16] : memref<232x64xf32, #tpu.memory_space<vmem>>, vector<72x32xf32>
    %cst_17 = arith.constant dense<0.000000e+00> : vector<2x32xf32>
    %30 = tpu.matmul %28, %29, %cst_17 {dimension_numbers = #tpu.dot_dimension_numbers<[1], [0], [0], [1], [0, 0, 1, 1], [], []>} : vector<2x72xf32>, vector<72x32xf32>, vector<2x32xf32> -> vector<2x32xf32>
    %cst_18 = arith.constant 0.000000e+00 : f32
    %31 = vector.broadcast %cst_18 : f32 to vector<2x32xf32>
    %32 = arith.maximumf %30, %31 : vector<2x32xf32>
    %cst_19 = arith.constant 1.000000e+00 : f32
    %33 = vector.broadcast %cst_19 : f32 to vector<2x8xf32>
    %34 = tpu.concatenate %32, %33 in 1 : vector<2x32xf32>, vector<2x8xf32> -> vector<2x40xf32>
    %c208 = arith.constant 208 : index
    %c0_20 = arith.constant 0 : index
    %35 = vector.load %arg2[%c208, %c0_20] : memref<232x64xf32, #tpu.memory_space<vmem>>, vector<1x40xf32>
    %36 = vector.broadcast %35 : vector<1x40xf32> to vector<2x40xf32>
    %37 = arith.mulf %34, %36 : vector<2x40xf32>
    %cst_21 = arith.constant dense<0.000000e+00> : vector<2xf32>
    %38 = vector.multi_reduction <add>, %37, %cst_21 [1] : vector<2x40xf32> to vector<2xf32>
    %39 = vector.shape_cast %38 : vector<2xf32> to vector<2x1xf32>
    %c0_22 = arith.constant 0 : index
    %c0_23 = arith.constant 0 : index
    %40 = vector.load %arg3[%c0_22, %c0_23] : memref<2x1xf32, #tpu.memory_space<vmem>>, vector<2x1xf32>
    tpu.vector_store %arg3[%c0_22, %c0_23], %39 {strides = array<i32>} : memref<2x1xf32, #tpu.memory_space<vmem>>, vector<2x1xf32>,
    return
  }
}

</mosaic_0001>

<bundles_post_ra>
// kernel: tpu_custom_call.1
= control target key start
LH: loop header
LB: loop body
LE: loop exit
PB: predicated region body
PF: predicated region fallthrough
CT: control target
= control target key end

     0   :  { %v265_v0 = vmov 0   ;;  %v16_v10 = vlaneseq  ;;  %vm37_vm0 = vcmask 457728   ;;  %v266_v13 = vmov 0.0   ;;  %s268_s30 = smov 32   ;;  %s400_s0 = inlined_call_operand.vmem [shape: s32[16,1], index: 0, kind: input, shape index: {}]   ;;  %s401_s2 = inlined_call_operand.vmem [shape: f32[232,64], index: 2, kind: input, shape index: {}]   ;;  %s402_s1 = inlined_call_operand.vmem [shape: f32[2,4], index: 1, kind: input, shape index: {}]   ;;  %s403_s3 = inlined_call_operand.vmem [shape: f32[2,1], index: 3, kind: output, shape index: {}]  }
   0x1   :  { %263 = vset.pattern.permute.xlu0 %v265_v0  ;;  %v14_v1 = vld [vmem:[%s400_s0] sm:$0xff]  ;;  %v36_v2 = vld [vmem:[%s401_s2 + $0x30] sm:$0xff]  ;;  %v35_v3 = vld [vmem:[%s401_s2 + $0x28] sm:$0xff]  ;;  %vm95_vm5 = vcmask 130048   ;;  %vm98_vm6 = vcmask 261120   ;;  %vm101_vm7 = vcmask 392192  }
   0x2   :  { %19 = vperm.xlu0 %263, %v14_v1   ;;  %53 = vmatpush.msra.mxu0 %v36_v2  ;;  %v34_v4 = vld [vmem:[%s401_s2 + $0x20] sm:$0xff]  ;;  %v33_v5 = vld [vmem:[%s401_s2 + $0x18] sm:$0xff]  ;;  %v15_v6 = vld [vmem:[%s400_s0 + $0x8] sm:$0xff]  ;;  %v17_v11 = vand.u32 127, %v16_v10  ;;  %v70_v18 = vshrl.u32 %v16_v10, 7  ;;  %s267_s0 = smov 16  }
   0x3   :  { %v32_v7 = vld [vmem:[%s401_s2 + $0x10] sm:$0xff]  ;;  %v31_v8 = vld [vmem:[%s401_s2 + $0x8] sm:$0xff]  ;;  %v30_v9 = vld [vmem:[%s401_s2] sm:$0xff]  ;;  %vm163_vm8 = vcmask 1041409   ;;  %vm171_vm9 = vcmask 162816   ;;  %vm176_vm10 = vcmask 195584  }
   0x4   :  { %54 = vmatpush.msra.mxu0 %v35_v3  ;;  %vm71_vm3 = vcmp.lt.s32.totalorder %v70_v18, 7  ;;  %vm76_vm4 = vcmp.lt.s32.totalorder %v70_v18, 6  ;;  %v110_v28 = vld [vmem:[%s401_s2 + $0x68] sm:$0xff]  ;;  %v109_v29 = vld [vmem:[%s401_s2 + $0x60] sm:$0xff]  ;;  %v108_v30 = vld [vmem:[%s401_s2 + $0x58] sm:$0xff]  ;;  %vm201_vm11 = vcmask 523264  }
   0x5   :  { %126 = vmatpush.msra.mxu1 %v110_v28  ;;  %v107_v31 = vld [vmem:[%s401_s2 + $0x50] sm:$0xff]  ;;  %v106_v32 = vld [vmem:[%s401_s2 + $0x48] sm:$0xff]  ;;  %v105_v33 = vld [vmem:[%s401_s2 + $0x40] sm:$0xff]  ;;  %vm212_vm12 = vcmask 588800   ;;  %vm241_vm13 = vcmask 320512   ;;  %vm245_vm14 = vcmask 1024  }
   0x6   :  { %55 = vmatpush.msra.mxu0 %v34_v4  ;;  %v104_v34 = vld [vmem:[%s401_s2 + $0x38] sm:$0xff]  ;;  %v160_v35 = vld [vmem:[%s402_s1] sm:$0x3]  ;;  %v173_v48 = vld [vmem:[%s401_s2 + $0x70] sm:$0xff] }
   0x7   :  { %127 = vmatpush.msra.mxu1 %v109_v29  ;;  %v175_v46 = vld [vmem:[%s401_s2 + $0x80] sm:$0xff]  ;;  %v174_v47 = vld [vmem:[%s401_s2 + $0x78] sm:$0xff]  ;;  %v211_v49 = vld [vmem:[%s401_s2 + $0xc8] sm:$0xff] }
   0x8   :  { %56 = vmatpush.msra.mxu0 %v33_v5  ;;  %193 = vmatpush.msra.mxu2 %v175_v46  ;;  %v210_v50 = vld [vmem:[%s401_s2 + $0xc0] sm:$0xff]  ;;  %v209_v51 = vld [vmem:[%s401_s2 + $0xb8] sm:$0xff]  ;;  %v208_v55 = vld [vmem:[%s401_s2 + $0xb0] sm:$0xff] }
   0x9   :  { %128 = vmatpush.msra.mxu1 %v108_v30  ;;  %223 = vmatpush.msra.mxu3 %v211_v49  ;;  %v142_v53 = vld [vmem:[%s401_s2 + $0xd8] sm:$0xff]  ;;  %v207_v57 = vld [vmem:[%s401_s2 + $0xa8] sm:$0xff]  ;;  %v206_v59 = vld [vmem:[%s401_s2 + $0xa0] sm:$0xff] }
   0xa   :  { %22 = vperm.xlu0 %263, %v15_v6   ;;  %57 = vmatpush.msra.mxu0 %v32_v7  ;;  %v205_v61 = vld [vmem:[%s401_s2 + $0x98] sm:$0xff]  ;;  %v143_v0 = vld [vmem:[%s401_s2 + $0xe0] sm:$0xff]  ;;  %v204_v18 = vld [vmem:[%s401_s2 + $0x90] sm:$0xff] }
   0xb   :  { %129 = vmatpush.msra.mxu1 %v107_v31  ;;  %194 = vmatpush.msra.mxu2 %v174_v47 }
   0xc   :  { %58 = vmatpush.msra.mxu0 %v31_v8  ;;  %224 = vmatpush.msra.mxu3 %v210_v50 }
   0xd   :  { %130 = vmatpush.msra.mxu1 %v106_v32  ;;  %195 = vmatpush.msra.mxu2 %v173_v48 }
   0xe   :  { %59 = vmatpush.msra.mxu0 %v30_v9  ;;  %225 = vmatpush.msra.mxu3 %v209_v51 }
   0xf   :  { %131 = vmatpush.msra.mxu1 %v105_v33 }
  0x10   :  { %226 = vmatpush.msra.mxu3 %v208_v55 }
  0x11   :  { %132 = vmatpush.msra.mxu1 %v104_v34 }
  0x12   :  { %167 = vrot.lane.b32.xlu0 %v160_v35, %s267_s0  ;;  %227 = vmatpush.msra.mxu3 %v207_v57 }
  0x14   :  { %228 = vmatpush.msra.mxu3 %v206_v59 }
  0x16   :  { %229 = vmatpush.msra.mxu3 %v205_v61 }
  0x18   :  { %230 = vmatpush.msra.mxu3 %v204_v18 }
  0x74   :  { %v20_v12 = vpop.permute.xlu0 %19 }
  0x75   :  { %vm24_vm1 = vcmp.eq.s32.totalorder %v17_v11, %v20_v12 }
  0x76   :  { %v251_v14 = vsel %vm24_vm1, 1.0, %v266_v13 }
  0x77   :  { %253 = vmatmul.msk.f32.vlgmr.msra.gmra.mxu0 %vm37_vm0, %v251_v14 }
  0x7c   :  { %v23_v15 = vpop.permute.xlu0 %22 }
  0x7d   :  { %vm25_vm2 = vcmp.eq.s32.totalorder %v17_v11, %v23_v15 }
  0x7e   :  { %v252_v16 = vsel %vm25_vm2, 1.0, %v266_v13 }
  0x7f   :  { %254 = vmatmul.msk.f32.gmra.mxu0 %vm37_vm0, %v252_v16 }
  0x84   :  { %v168_v14 = vpop.permute.xlu0 %167 }
  0xf4   :  { %v61_v17 = vpop.f32.mrf.mxu0 }
  0xf5   :  { %v67_v20 = vrot.slane %v61_v17, 1  ;;  %v74_v25 = vrot.slane %v61_v17, 2 }
  0xfc   :  { %v64_v19 = vpop.f32.mrf.mxu0 }
  0xfd   :  { %v68_v21 = vrot.slane %v64_v19, 1  ;;  %v75_v24 = vrot.slane %v64_v19, 2 }
  0xff   :  { %v73_v22 = vsel %vm71_vm3, %v68_v21, %v67_v20  ;;  %v72_v23 = vsel %vm71_vm3, %v67_v20, %v68_v21  ;;  %v78_v26 = vsel %vm76_vm4, %v75_v24, %v74_v25  ;;  %v77_v27 = vsel %vm76_vm4, %v74_v25, %v75_v24  ;;  %v264_v24 = vld [vmem:[%s401_s2 + $0xd0] ss:$0 sm:$0xff] }
 0x100   :  { %83 = vrot.lane.b32.xlu2 %v73_v22, %s267_s0  ;;  %81 = vrot.lane.b32.xlu1 %v72_v23, %s267_s0 }
 0x108   :  { %91 = vrot.lane.b32.xlu2 %v78_v26, %s268_s30  ;;  %89 = vrot.lane.b32.xlu1 %v77_v27, %s268_s30 }
 0x15a   :  { %v84_v37 = vpop.permute.xlu2 %83 }
 0x15b   :  { %v97_v43 = vsel %vm95_vm5, %v64_v19, %v84_v37  ;;  %v203_v19 = vld [vmem:[%s401_s2 + $0x88] sm:$0xff] }
 0x15c   :  { %231 = vmatpush.msra.mxu3 %v203_v19 }
 0x162   :  { %v92_v42 = vpop.permute.xlu2 %91 }
 0x163   :  { %v100_v44 = vsel %vm98_vm6, %v97_v43, %v92_v42 }
 0x164   :  { %v103_v45 = vsel %vm101_vm7, %v100_v44, 1.0 }
 0x172   :  { %v82_v36 = vpop.permute.xlu1 %81 }
 0x173   :  { %v96_v38 = vsel %vm95_vm5, %v61_v17, %v82_v36 }
 0x17a   :  { %v90_v39 = vpop.permute.xlu1 %89 }
 0x17b   :  { %v99_v40 = vsel %vm98_vm6, %v96_v38, %v90_v39 }
 0x17c   :  { %v102_v41 = vsel %vm101_vm7, %v99_v40, 1.0 }
 0x17d   :  { %255 = vmatmul.msk.f32.vlgmr.msra.gmra.mxu1 %vm37_vm0, %v102_v41 }
 0x185   :  { %256 = vmatmul.msk.f32.gmra.mxu1 %vm37_vm0, %v103_v45 }
 0x1fa   :  { %v134_v52 = vpop.f32.mrf.mxu1 }
 0x1fb   :  { %v140_v54 = vmax.f32 %v134_v52, 0.0 }
 0x1fd   :  { %v144_v56 = vmul.f32 %v142_v53, %v140_v54 }
 0x1ff   :  { %v146_v58 = vsel %vm95_vm5, %v144_v56, -inf }
 0x200   :  { %v147_v60 = vrot.slane %v146_v58, 4 }
 0x202   :  { %v148_v62 = vmax.f32 %v146_v58, %v147_v60  ;;  %v137_v63 = vpop.f32.mrf.mxu1 }
 0x203   :  { %v141_v1 = vmax.f32 %v137_v63, 0.0 }
 0x204   :  { %v149_v3 = vrot.slane %v148_v62, 2 }
 0x205   :  { %v145_v2 = vmul.f32 %v143_v0, %v141_v1 }
 0x206   :  { %v150_v6 = vmax.f32 %v148_v62, %v149_v3 }
 0x207   :  { %v153_v4 = vsel %vm95_vm5, %v145_v2, -inf }
 0x208   :  { %v154_v5 = vrot.slane %v153_v4, 4  ;;  %v151_v9 = vrot.slane %v150_v6, 1 }
 0x20a   :  { %v155_v7 = vmax.f32 %v153_v4, %v154_v5  ;;  %v152_v12 = vmax.f32 %v150_v6, %v151_v9 }
 0x20c   :  { %v156_v8 = vrot.slane %v155_v7, 2 }
 0x20e   :  { %v157_v10 = vmax.f32 %v155_v7, %v156_v8 }
 0x210   :  { %v158_v11 = vrot.slane %v157_v10, 1 }
 0x212   :  { %v159_v13 = vmax.f32 %v157_v10, %v158_v11 }
 0x214   :  { %v164_v15 = vsel %vm163_vm8, %v159_v13, %v152_v12 }
 0x215   :  { %v170_v16 = vsel %vm95_vm5, %v164_v15, %v168_v14 }
 0x216   :  { %v172_v17 = vsel %vm171_vm9, %v170_v16, 1.0 }
 0x217   :  { %257 = vmatmul.msk.f32.vlgmr.msra.gmra.mxu2 %vm176_vm10, %v172_v17 }
 0x29a   :  { %v197_v20 = vpop.f32.mrf.mxu2 }
 0x29b   :  { %v200_v21 = vmax.f32 %v197_v20, 0.0 }
 0x29d   :  { %v202_v22 = vsel %vm201_vm11, %v200_v21, 1.0 }
 0x29e   :  { %258 = vmatmul.msk.f32.vlgmr.msra.gmra.mxu3 %vm212_vm12, %v202_v22 }
 0x321   :  { %v233_v23 = vpop.f32.mrf.mxu3 }
 0x322   :  { %v236_v25 = vmax.f32 %v233_v23, 0.0 }
 0x324   :  { %v237_v26 = vsel %vm98_vm6, %v236_v25, 1.0 }
 0x325   :  { %v240_v27 = vmul.f32 %v264_v24, %v237_v26 }
 0x327   :  { %v242_v28 = vsel %vm241_vm13, %v240_v27, 0.0 }
 0x328   :  { %243 = vadd.xlane.f32.xlu1 %v242_v28 }
 0x39b   :  { %v244_v29 = vpop.xlane.xlu1 %243 }
 0x39c   :  { %246 = vst.msk [vmem:[%s403_s3] sm:$0x3] %vm245_vm14, %v244_v29 }

</bundles_post_ra>
